<compile_context>
chip_gen: v5e
topology: v5e:2x2
jax: 0.10.0
libtpu: 0.0.40
codegen_flags: <defaults>
</compile_context>

<pallas_src>
import jax
import jax.numpy as jnp
from jax.experimental import pallas as pl
from jax.experimental.pallas import tpu as pltpu


def _make_discriminator_cnn_kernel(num_convs):
    """Builds a fused kernel handling `num_convs` parallel Conv1d branches."""

    def kernel(*refs):
        # refs = [x, emb_w, emb_b, (conv_w, conv_b) * num_convs, fc_w, fc_b, out]
        x_ref = refs[0]                        # (1, S, V)  one-hot rows, f32
        we_ref = refs[1]                       # (V, H)     emb weight, (in, out)
        be_ref = refs[2]                       # (1, H)
        conv_refs = refs[3:3 + 2 * num_convs]  # per branch: (fs, H, F), (1, F)
        wo_ref = refs[3 + 2 * num_convs]       # (sum(F), NC) fc weight, (in, out)
        bo_ref = refs[4 + 2 * num_convs]       # (1, NC)
        o_ref = refs[5 + 2 * num_convs]        # (1, 1, NC)

        x = x_ref[0]                                                   # (S, V)
        seq = x.shape[0]

        # one_hot_to_emb: x @ We + be  (weight pre-transposed in the wrapper)
        emb = jnp.dot(x, we_ref[...],
                      preferred_element_type=jnp.float32) + be_ref[...]  # (S, H)

        wo = wo_ref[...]                                               # (sumF, NC)
        logits = bo_ref[...]                                           # (1, NC)

        row_off = 0
        for c in range(num_convs):
            wc_ref = conv_refs[2 * c]                                  # (fs, H, F)
            bc_ref = conv_refs[2 * c + 1]                              # (1, F)
            fs = wc_ref.shape[0]
            nf = wc_ref.shape[2]
            s_out = seq - fs + 1

            # Conv1d (stride 1, no padding) == sum over taps of shifted
            # (S_out, H) @ (H, F) matmuls, accumulated in f32 on the MXU.
            acc = jnp.zeros((s_out, nf), jnp.float32)
            for j in range(fs):
                acc = acc + jnp.dot(emb[j:j + s_out, :], wc_ref[j],
                                    preferred_element_type=jnp.float32)
            acc = jnp.maximum(acc + bc_ref[...], 0.0)                  # bias + ReLU
            pooled = jnp.max(acc, axis=0, keepdims=True)               # (1, F) global max-pool

            # dropout(p=0.5) is the identity in eval mode.
            # TODO(synk): training-mode dropout (RNG mask via pltpu.prng_*) not implemented.

            # Fold fc_out per branch: pooled_i @ Wo[rows of branch i] — avoids a
            # lane-axis concatenate of the pooled tiles inside the kernel.
            logits = logits + jnp.dot(pooled, wo[row_off:row_off + nf, :],
                                      preferred_element_type=jnp.float32)
            row_off += nf

        o_ref[...] = logits.reshape(1, 1, -1)

    return kernel


def discriminator_cnn_forward(x, emb_w, emb_b, conv_ws, conv_bs, fc_w, fc_b):
    """x: (B, S, V) float32 (one-hot rows). Returns (B, num_classes) float32."""
    B, S, V = x.shape
    H = emb_w.shape[0]
    NC = fc_w.shape[0]
    num_convs = len(conv_ws)

    we_t = emb_w.T                               # (V, H)   (in, out)
    be = emb_b.reshape(1, H)

    conv_args = []
    conv_specs = []
    for w, b in zip(conv_ws, conv_bs):
        nf, _, fs = w.shape                      # torch layout: (out, in, fs)
        w_t = jnp.transpose(w, (2, 1, 0))        # (fs, H, F)  (tap, in, out)
        conv_args += [w_t, b.reshape(1, nf)]
        conv_specs += [
            pl.BlockSpec((fs, H, nf), lambda i: (0, 0, 0)),
            pl.BlockSpec((1, nf), lambda i: (0, 0)),
        ]

    wo_t = fc_w.T                                # (sum(F), NC)
    bo = fc_b.reshape(1, NC)

    out = pl.pallas_call(
        _make_discriminator_cnn_kernel(num_convs),
        out_shape=jax.ShapeDtypeStruct((B, 1, NC), jnp.float32),
        grid=(B,),
        in_specs=[
            pl.BlockSpec((1, S, V), lambda i: (i, 0, 0)),   # one batch row / grid step
            pl.BlockSpec((V, H), lambda i: (0, 0)),         # constant index maps ->
            pl.BlockSpec((1, H), lambda i: (0, 0)),         #   weights DMA'd once
            *conv_specs,
            pl.BlockSpec(wo_t.shape, lambda i: (0, 0)),
            pl.BlockSpec((1, NC), lambda i: (0, 0)),
        ],
        out_specs=pl.BlockSpec((1, 1, NC), lambda i: (i, 0, 0)),
        compiler_params=pltpu.CompilerParams(
            # batch rows are independent -> shard across both TCs on v7x;
            # neutral (1 TC) on v5e/v6e.
            dimension_semantics=("parallel",),
        ),
    )(x, we_t, be, *conv_args, wo_t, bo)

    out = out.reshape(B, NC)
    if NC == 1:                                   # matches torch logits.squeeze()
        out = out.squeeze()
    return out


def _reference_forward(x, emb_w, emb_b, conv_ws, conv_bs, fc_w, fc_b):
    """Pure-JAX reference matching the PyTorch forward (eval mode)."""
    hp = jax.lax.Precision.HIGHEST
    emb = jnp.einsum('bsv,hv->bsh', x, emb_w, precision=hp) + emb_b      # (B, S, H)
    feats = []
    for w, b in zip(conv_ws, conv_bs):
        fs = w.shape[2]
        s_out = emb.shape[1] - fs + 1
        conv = jnp.zeros((x.shape[0], s_out, w.shape[0]), jnp.float32)
        for j in range(fs):
            conv = conv + jnp.einsum('bsh,fh->bsf', emb[:, j:j + s_out, :],
                                     w[:, :, j], precision=hp)
        conv = jax.nn.relu(conv + b)
        feats.append(jnp.max(conv, axis=1))                              # (B, F)
    feat = jnp.concatenate(feats, axis=-1)                               # (B, sum(F))
    return jnp.einsum('bf,cf->bc', feat, fc_w, precision=hp) + fc_b      # (B, NC)


if __name__ == "__main__":
    # Small shapes consistent with the module defaults.
    input_size = 50                  # one-hot width (vocab)
    hidden_size = 32
    filter_sizes = [3, 4, 5]
    num_filters = [100, 100, 100]
    num_classes = 2
    batch, seq = 4, 8                # seq >= max(filter_sizes)

    key = jax.random.PRNGKey(0)
    ks = list(jax.random.split(key, 5 + 2 * len(filter_sizes)))

    tokens = jax.random.randint(ks[0], (batch, seq), 0, input_size, dtype=jnp.int32)
    x = jax.nn.one_hot(tokens, input_size, dtype=jnp.float32)            # (B, S, V)

    emb_w = jax.random.normal(ks[1], (hidden_size, input_size), jnp.float32) * 0.1
    emb_b = jax.random.normal(ks[2], (hidden_size,), jnp.float32) * 0.1

    conv_ws, conv_bs = [], []
    for i, fs in enumerate(filter_sizes):
        conv_ws.append(jax.random.normal(
            ks[3 + 2 * i], (num_filters[i], hidden_size, fs), jnp.float32) * 0.1)
        conv_bs.append(jax.random.normal(
            ks[4 + 2 * i], (num_filters[i],), jnp.float32) * 0.1)

    fc_w = jax.random.normal(ks[3 + 2 * len(filter_sizes)],
                             (num_classes, sum(num_filters)), jnp.float32) * 0.1
    fc_b = jax.random.normal(ks[4 + 2 * len(filter_sizes)],
                             (num_classes,), jnp.float32) * 0.1

    out = discriminator_cnn_forward(x, emb_w, emb_b, conv_ws, conv_bs, fc_w, fc_b)
    out = jax.block_until_ready(out)

    ref = _reference_forward(x, emb_w, emb_b, conv_ws, conv_bs, fc_w, fc_b)
    assert out.shape == (batch, num_classes), out.shape
    assert jnp.allclose(out, ref, atol=1e-3, rtol=1e-3), (out, ref)

    print("KERNEL_OK")
</pallas_src>

<mosaic_0001>
module attributes {stable_mosaic.version = 11 : i64} {
  func.func @kernel(%arg0: i32, %arg1: memref<1x8x50xf32, #tpu.memory_space<vmem>>, %arg2: memref<50x32xf32, #tpu.memory_space<vmem>>, %arg3: memref<1x32xf32, #tpu.memory_space<vmem>>, %arg4: memref<3x32x100xf32, #tpu.memory_space<vmem>>, %arg5: memref<1x100xf32, #tpu.memory_space<vmem>>, %arg6: memref<4x32x100xf32, #tpu.memory_space<vmem>>, %arg7: memref<1x100xf32, #tpu.memory_space<vmem>>, %arg8: memref<5x32x100xf32, #tpu.memory_space<vmem>>, %arg9: memref<1x100xf32, #tpu.memory_space<vmem>>, %arg10: memref<300x2xf32, #tpu.memory_space<vmem>>, %arg11: memref<1x2xf32, #tpu.memory_space<vmem>>, %arg12: memref<1x1x2xf32, #tpu.memory_space<vmem>>) attributes {dimension_semantics = [#tpu.dimension_semantics<parallel>], iteration_bounds = array<i64: 4>, scalar_prefetch = 0 : i64, scratch_operands = 0 : i64, tpu.core_type = #tpu.core_type<tc>, window_params = [{transform_indices = @transform_0, window_bounds = array<i64: 1, 8, 50>}, {pipeline_mode = #tpu.pipeline_mode<synchronous>, transform_indices = @transform_1, window_bounds = array<i64: 50, 32>}, {pipeline_mode = #tpu.pipeline_mode<synchronous>, transform_indices = @transform_2, window_bounds = array<i64: 1, 32>}, {pipeline_mode = #tpu.pipeline_mode<synchronous>, transform_indices = @transform_3, window_bounds = array<i64: 3, 32, 100>}, {pipeline_mode = #tpu.pipeline_mode<synchronous>, transform_indices = @transform_4, window_bounds = array<i64: 1, 100>}, {pipeline_mode = #tpu.pipeline_mode<synchronous>, transform_indices = @transform_5, window_bounds = array<i64: 4, 32, 100>}, {pipeline_mode = #tpu.pipeline_mode<synchronous>, transform_indices = @transform_6, window_bounds = array<i64: 1, 100>}, {pipeline_mode = #tpu.pipeline_mode<synchronous>, transform_indices = @transform_7, window_bounds = array<i64: 5, 32, 100>}, {pipeline_mode = #tpu.pipeline_mode<synchronous>, transform_indices = @transform_8, window_bounds = array<i64: 1, 100>}, {pipeline_mode = #tpu.pipeline_mode<synchronous>, transform_indices = @transform_9, window_bounds = array<i64: 300, 2>}, {pipeline_mode = #tpu.pipeline_mode<synchronous>, transform_indices = @transform_10, window_bounds = array<i64: 1, 2>}, {transform_indices = @transform_11, window_bounds = array<i64: 1, 1, 2>}]} {
    %c0 = arith.constant 0 : index
    %c0_0 = arith.constant 0 : index
    %c0_1 = arith.constant 0 : index
    %0 = vector.load %arg1[%c0, %c0_0, %c0_1] : memref<1x8x50xf32, #tpu.memory_space<vmem>>, vector<1x8x50xf32>
    %1 = vector.shape_cast %0 : vector<1x8x50xf32> to vector<8x50xf32>
    %c0_2 = arith.constant 0 : index
    %c0_3 = arith.constant 0 : index
    %2 = vector.load %arg2[%c0_2, %c0_3] : memref<50x32xf32, #tpu.memory_space<vmem>>, vector<50x32xf32>
    %cst = arith.constant dense<0.000000e+00> : vector<8x32xf32>
    %3 = tpu.matmul %1, %2, %cst {dimension_numbers = #tpu.dot_dimension_numbers<[1], [0], [0], [1], [0, 0, 1, 1], [], []>} : vector<8x50xf32>, vector<50x32xf32>, vector<8x32xf32> -> vector<8x32xf32>
    %c0_4 = arith.constant 0 : index
    %c0_5 = arith.constant 0 : index
    %4 = vector.load %arg3[%c0_4, %c0_5] : memref<1x32xf32, #tpu.memory_space<vmem>>, vector<1x32xf32>
    %5 = vector.broadcast %4 : vector<1x32xf32> to vector<8x32xf32>
    %6 = arith.addf %3, %5 : vector<8x32xf32>
    %c0_6 = arith.constant 0 : index
    %c0_7 = arith.constant 0 : index
    %7 = vector.load %arg10[%c0_6, %c0_7] : memref<300x2xf32, #tpu.memory_space<vmem>>, vector<300x2xf32>
    %c0_8 = arith.constant 0 : index
    %c0_9 = arith.constant 0 : index
    %8 = vector.load %arg11[%c0_8, %c0_9] : memref<1x2xf32, #tpu.memory_space<vmem>>, vector<1x2xf32>
    %cst_10 = arith.constant 0.000000e+00 : f32
    %9 = vector.broadcast %cst_10 : f32 to vector<6x100xf32>
    %10 = vector.extract_strided_slice %6 {offsets = [0, 0], sizes = [6, 32], strides = [1, 1]} : vector<8x32xf32> to vector<6x32xf32>
    %c0_11 = arith.constant 0 : index
    %c0_12 = arith.constant 0 : index
    %c0_13 = arith.constant 0 : index
    %11 = vector.load %arg4[%c0_11, %c0_12, %c0_13] : memref<3x32x100xf32, #tpu.memory_space<vmem>>, vector<1x32x100xf32>
    %12 = vector.shape_cast %11 : vector<1x32x100xf32> to vector<32x100xf32>
    %cst_14 = arith.constant dense<0.000000e+00> : vector<6x100xf32>
    %13 = tpu.matmul %10, %12, %cst_14 {dimension_numbers = #tpu.dot_dimension_numbers<[1], [0], [0], [1], [0, 0, 1, 1], [], []>} : vector<6x32xf32>, vector<32x100xf32>, vector<6x100xf32> -> vector<6x100xf32>
    %14 = arith.addf %9, %13 : vector<6x100xf32>
    %15 = vector.extract_strided_slice %6 {offsets = [1, 0], sizes = [6, 32], strides = [1, 1]} : vector<8x32xf32> to vector<6x32xf32>
    %c1 = arith.constant 1 : index
    %c0_15 = arith.constant 0 : index
    %c0_16 = arith.constant 0 : index
    %16 = vector.load %arg4[%c1, %c0_15, %c0_16] : memref<3x32x100xf32, #tpu.memory_space<vmem>>, vector<1x32x100xf32>
    %17 = vector.shape_cast %16 : vector<1x32x100xf32> to vector<32x100xf32>
    %cst_17 = arith.constant dense<0.000000e+00> : vector<6x100xf32>
    %18 = tpu.matmul %15, %17, %cst_17 {dimension_numbers = #tpu.dot_dimension_numbers<[1], [0], [0], [1], [0, 0, 1, 1], [], []>} : vector<6x32xf32>, vector<32x100xf32>, vector<6x100xf32> -> vector<6x100xf32>
    %19 = arith.addf %14, %18 : vector<6x100xf32>
    %20 = vector.extract_strided_slice %6 {offsets = [2, 0], sizes = [6, 32], strides = [1, 1]} : vector<8x32xf32> to vector<6x32xf32>
    %c2 = arith.constant 2 : index
    %c0_18 = arith.constant 0 : index
    %c0_19 = arith.constant 0 : index
    %21 = vector.load %arg4[%c2, %c0_18, %c0_19] : memref<3x32x100xf32, #tpu.memory_space<vmem>>, vector<1x32x100xf32>
    %22 = vector.shape_cast %21 : vector<1x32x100xf32> to vector<32x100xf32>
    %cst_20 = arith.constant dense<0.000000e+00> : vector<6x100xf32>
    %23 = tpu.matmul %20, %22, %cst_20 {dimension_numbers = #tpu.dot_dimension_numbers<[1], [0], [0], [1], [0, 0, 1, 1], [], []>} : vector<6x32xf32>, vector<32x100xf32>, vector<6x100xf32> -> vector<6x100xf32>
    %24 = arith.addf %19, %23 : vector<6x100xf32>
    %c0_21 = arith.constant 0 : index
    %c0_22 = arith.constant 0 : index
    %25 = vector.load %arg5[%c0_21, %c0_22] : memref<1x100xf32, #tpu.memory_space<vmem>>, vector<1x100xf32>
    %26 = vector.broadcast %25 : vector<1x100xf32> to vector<6x100xf32>
    %27 = arith.addf %24, %26 : vector<6x100xf32>
    %cst_23 = arith.constant 0.000000e+00 : f32
    %28 = vector.broadcast %cst_23 : f32 to vector<6x100xf32>
    %29 = arith.maximumf %27, %28 : vector<6x100xf32>
    %cst_24 = arith.constant dense<0xFF800000> : vector<100xf32>
    %30 = vector.multi_reduction <maximumf>, %29, %cst_24 [0] : vector<6x100xf32> to vector<100xf32>
    %31 = vector.shape_cast %30 : vector<100xf32> to vector<1x100xf32>
    %32 = vector.extract_strided_slice %7 {offsets = [0, 0], sizes = [100, 2], strides = [1, 1]} : vector<300x2xf32> to vector<100x2xf32>
    %cst_25 = arith.constant dense<0.000000e+00> : vector<1x2xf32>
    %33 = tpu.matmul %31, %32, %cst_25 {dimension_numbers = #tpu.dot_dimension_numbers<[1], [0], [0], [1], [0, 0, 1, 1], [], []>} : vector<1x100xf32>, vector<100x2xf32>, vector<1x2xf32> -> vector<1x2xf32>
    %34 = arith.addf %8, %33 : vector<1x2xf32>
    %cst_26 = arith.constant 0.000000e+00 : f32
    %35 = vector.broadcast %cst_26 : f32 to vector<5x100xf32>
    %36 = vector.extract_strided_slice %6 {offsets = [0, 0], sizes = [5, 32], strides = [1, 1]} : vector<8x32xf32> to vector<5x32xf32>
    %c0_27 = arith.constant 0 : index
    %c0_28 = arith.constant 0 : index
    %c0_29 = arith.constant 0 : index
    %37 = vector.load %arg6[%c0_27, %c0_28, %c0_29] : memref<4x32x100xf32, #tpu.memory_space<vmem>>, vector<1x32x100xf32>
    %38 = vector.shape_cast %37 : vector<1x32x100xf32> to vector<32x100xf32>
    %cst_30 = arith.constant dense<0.000000e+00> : vector<5x100xf32>
    %39 = tpu.matmul %36, %38, %cst_30 {dimension_numbers = #tpu.dot_dimension_numbers<[1], [0], [0], [1], [0, 0, 1, 1], [], []>} : vector<5x32xf32>, vector<32x100xf32>, vector<5x100xf32> -> vector<5x100xf32>
    %40 = arith.addf %35, %39 : vector<5x100xf32>
    %41 = vector.extract_strided_slice %6 {offsets = [1, 0], sizes = [5, 32], strides = [1, 1]} : vector<8x32xf32> to vector<5x32xf32>
    %c1_31 = arith.constant 1 : index
    %c0_32 = arith.constant 0 : index
    %c0_33 = arith.constant 0 : index
    %42 = vector.load %arg6[%c1_31, %c0_32, %c0_33] : memref<4x32x100xf32, #tpu.memory_space<vmem>>, vector<1x32x100xf32>
    %43 = vector.shape_cast %42 : vector<1x32x100xf32> to vector<32x100xf32>
    %cst_34 = arith.constant dense<0.000000e+00> : vector<5x100xf32>
    %44 = tpu.matmul %41, %43, %cst_34 {dimension_numbers = #tpu.dot_dimension_numbers<[1], [0], [0], [1], [0, 0, 1, 1], [], []>} : vector<5x32xf32>, vector<32x100xf32>, vector<5x100xf32> -> vector<5x100xf32>
    %45 = arith.addf %40, %44 : vector<5x100xf32>
    %46 = vector.extract_strided_slice %6 {offsets = [2, 0], sizes = [5, 32], strides = [1, 1]} : vector<8x32xf32> to vector<5x32xf32>
    %c2_35 = arith.constant 2 : index
    %c0_36 = arith.constant 0 : index
    %c0_37 = arith.constant 0 : index
    %47 = vector.load %arg6[%c2_35, %c0_36, %c0_37] : memref<4x32x100xf32, #tpu.memory_space<vmem>>, vector<1x32x100xf32>
    %48 = vector.shape_cast %47 : vector<1x32x100xf32> to vector<32x100xf32>
    %cst_38 = arith.constant dense<0.000000e+00> : vector<5x100xf32>
    %49 = tpu.matmul %46, %48, %cst_38 {dimension_numbers = #tpu.dot_dimension_numbers<[1], [0], [0], [1], [0, 0, 1, 1], [], []>} : vector<5x32xf32>, vector<32x100xf32>, vector<5x100xf32> -> vector<5x100xf32>
    %50 = arith.addf %45, %49 : vector<5x100xf32>
    %51 = vector.extract_strided_slice %6 {offsets = [3, 0], sizes = [5, 32], strides = [1, 1]} : vector<8x32xf32> to vector<5x32xf32>
    %c3 = arith.constant 3 : index
    %c0_39 = arith.constant 0 : index
    %c0_40 = arith.constant 0 : index
    %52 = vector.load %arg6[%c3, %c0_39, %c0_40] : memref<4x32x100xf32, #tpu.memory_space<vmem>>, vector<1x32x100xf32>
    %53 = vector.shape_cast %52 : vector<1x32x100xf32> to vector<32x100xf32>
    %cst_41 = arith.constant dense<0.000000e+00> : vector<5x100xf32>
    %54 = tpu.matmul %51, %53, %cst_41 {dimension_numbers = #tpu.dot_dimension_numbers<[1], [0], [0], [1], [0, 0, 1, 1], [], []>} : vector<5x32xf32>, vector<32x100xf32>, vector<5x100xf32> -> vector<5x100xf32>
    %55 = arith.addf %50, %54 : vector<5x100xf32>
    %c0_42 = arith.constant 0 : index
    %c0_43 = arith.constant 0 : index
    %56 = vector.load %arg7[%c0_42, %c0_43] : memref<1x100xf32, #tpu.memory_space<vmem>>, vector<1x100xf32>
    %57 = vector.broadcast %56 : vector<1x100xf32> to vector<5x100xf32>
    %58 = arith.addf %55, %57 : vector<5x100xf32>
    %cst_44 = arith.constant 0.000000e+00 : f32
    %59 = vector.broadcast %cst_44 : f32 to vector<5x100xf32>
    %60 = arith.maximumf %58, %59 : vector<5x100xf32>
    %cst_45 = arith.constant dense<0xFF800000> : vector<100xf32>
    %61 = vector.multi_reduction <maximumf>, %60, %cst_45 [0] : vector<5x100xf32> to vector<100xf32>
    %62 = vector.shape_cast %61 : vector<100xf32> to vector<1x100xf32>
    %63 = vector.extract_strided_slice %7 {offsets = [100, 0], sizes = [100, 2], strides = [1, 1]} : vector<300x2xf32> to vector<100x2xf32>
    %cst_46 = arith.constant dense<0.000000e+00> : vector<1x2xf32>
    %64 = tpu.matmul %62, %63, %cst_46 {dimension_numbers = #tpu.dot_dimension_numbers<[1], [0], [0], [1], [0, 0, 1, 1], [], []>} : vector<1x100xf32>, vector<100x2xf32>, vector<1x2xf32> -> vector<1x2xf32>
    %65 = arith.addf %34, %64 : vector<1x2xf32>
    %cst_47 = arith.constant 0.000000e+00 : f32
    %66 = vector.broadcast %cst_47 : f32 to vector<4x100xf32>
    %67 = vector.extract_strided_slice %6 {offsets = [0, 0], sizes = [4, 32], strides = [1, 1]} : vector<8x32xf32> to vector<4x32xf32>
    %c0_48 = arith.constant 0 : index
    %c0_49 = arith.constant 0 : index
    %c0_50 = arith.constant 0 : index
    %68 = vector.load %arg8[%c0_48, %c0_49, %c0_50] : memref<5x32x100xf32, #tpu.memory_space<vmem>>, vector<1x32x100xf32>
    %69 = vector.shape_cast %68 : vector<1x32x100xf32> to vector<32x100xf32>
    %cst_51 = arith.constant dense<0.000000e+00> : vector<4x100xf32>
    %70 = tpu.matmul %67, %69, %cst_51 {dimension_numbers = #tpu.dot_dimension_numbers<[1], [0], [0], [1], [0, 0, 1, 1], [], []>} : vector<4x32xf32>, vector<32x100xf32>, vector<4x100xf32> -> vector<4x100xf32>
    %71 = arith.addf %66, %70 : vector<4x100xf32>
    %72 = vector.extract_strided_slice %6 {offsets = [1, 0], sizes = [4, 32], strides = [1, 1]} : vector<8x32xf32> to vector<4x32xf32>
    %c1_52 = arith.constant 1 : index
    %c0_53 = arith.constant 0 : index
    %c0_54 = arith.constant 0 : index
    %73 = vector.load %arg8[%c1_52, %c0_53, %c0_54] : memref<5x32x100xf32, #tpu.memory_space<vmem>>, vector<1x32x100xf32>
    %74 = vector.shape_cast %73 : vector<1x32x100xf32> to vector<32x100xf32>
    %cst_55 = arith.constant dense<0.000000e+00> : vector<4x100xf32>
    %75 = tpu.matmul %72, %74, %cst_55 {dimension_numbers = #tpu.dot_dimension_numbers<[1], [0], [0], [1], [0, 0, 1, 1], [], []>} : vector<4x32xf32>, vector<32x100xf32>, vector<4x100xf32> -> vector<4x100xf32>
    %76 = arith.addf %71, %75 : vector<4x100xf32>
    %77 = vector.extract_strided_slice %6 {offsets = [2, 0], sizes = [4, 32], strides = [1, 1]} : vector<8x32xf32> to vector<4x32xf32>
    %c2_56 = arith.constant 2 : index
    %c0_57 = arith.constant 0 : index
    %c0_58 = arith.constant 0 : index
    %78 = vector.load %arg8[%c2_56, %c0_57, %c0_58] : memref<5x32x100xf32, #tpu.memory_space<vmem>>, vector<1x32x100xf32>
    %79 = vector.shape_cast %78 : vector<1x32x100xf32> to vector<32x100xf32>
    %cst_59 = arith.constant dense<0.000000e+00> : vector<4x100xf32>
    %80 = tpu.matmul %77, %79, %cst_59 {dimension_numbers = #tpu.dot_dimension_numbers<[1], [0], [0], [1], [0, 0, 1, 1], [], []>} : vector<4x32xf32>, vector<32x100xf32>, vector<4x100xf32> -> vector<4x100xf32>
    %81 = arith.addf %76, %80 : vector<4x100xf32>
    %82 = vector.extract_strided_slice %6 {offsets = [3, 0], sizes = [4, 32], strides = [1, 1]} : vector<8x32xf32> to vector<4x32xf32>
    %c3_60 = arith.constant 3 : index
    %c0_61 = arith.constant 0 : index
    %c0_62 = arith.constant 0 : index
    %83 = vector.load %arg8[%c3_60, %c0_61, %c0_62] : memref<5x32x100xf32, #tpu.memory_space<vmem>>, vector<1x32x100xf32>
    %84 = vector.shape_cast %83 : vector<1x32x100xf32> to vector<32x100xf32>
    %cst_63 = arith.constant dense<0.000000e+00> : vector<4x100xf32>
    %85 = tpu.matmul %82, %84, %cst_63 {dimension_numbers = #tpu.dot_dimension_numbers<[1], [0], [0], [1], [0, 0, 1, 1], [], []>} : vector<4x32xf32>, vector<32x100xf32>, vector<4x100xf32> -> vector<4x100xf32>
    %86 = arith.addf %81, %85 : vector<4x100xf32>
    %87 = vector.extract_strided_slice %6 {offsets = [4, 0], sizes = [4, 32], strides = [1, 1]} : vector<8x32xf32> to vector<4x32xf32>
    %c4 = arith.constant 4 : index
    %c0_64 = arith.constant 0 : index
    %c0_65 = arith.constant 0 : index
    %88 = vector.load %arg8[%c4, %c0_64, %c0_65] : memref<5x32x100xf32, #tpu.memory_space<vmem>>, vector<1x32x100xf32>
    %89 = vector.shape_cast %88 : vector<1x32x100xf32> to vector<32x100xf32>
    %cst_66 = arith.constant dense<0.000000e+00> : vector<4x100xf32>
    %90 = tpu.matmul %87, %89, %cst_66 {dimension_numbers = #tpu.dot_dimension_numbers<[1], [0], [0], [1], [0, 0, 1, 1], [], []>} : vector<4x32xf32>, vector<32x100xf32>, vector<4x100xf32> -> vector<4x100xf32>
    %91 = arith.addf %86, %90 : vector<4x100xf32>
    %c0_67 = arith.constant 0 : index
    %c0_68 = arith.constant 0 : index
    %92 = vector.load %arg9[%c0_67, %c0_68] : memref<1x100xf32, #tpu.memory_space<vmem>>, vector<1x100xf32>
    %93 = vector.broadcast %92 : vector<1x100xf32> to vector<4x100xf32>
    %94 = arith.addf %91, %93 : vector<4x100xf32>
    %cst_69 = arith.constant 0.000000e+00 : f32
    %95 = vector.broadcast %cst_69 : f32 to vector<4x100xf32>
    %96 = arith.maximumf %94, %95 : vector<4x100xf32>
    %cst_70 = arith.constant dense<0xFF800000> : vector<100xf32>
    %97 = vector.multi_reduction <maximumf>, %96, %cst_70 [0] : vector<4x100xf32> to vector<100xf32>
    %98 = vector.shape_cast %97 : vector<100xf32> to vector<1x100xf32>
    %99 = vector.extract_strided_slice %7 {offsets = [200, 0], sizes = [100, 2], strides = [1, 1]} : vector<300x2xf32> to vector<100x2xf32>
    %cst_71 = arith.constant dense<0.000000e+00> : vector<1x2xf32>
    %100 = tpu.matmul %98, %99, %cst_71 {dimension_numbers = #tpu.dot_dimension_numbers<[1], [0], [0], [1], [0, 0, 1, 1], [], []>} : vector<1x100xf32>, vector<100x2xf32>, vector<1x2xf32> -> vector<1x2xf32>
    %101 = arith.addf %65, %100 : vector<1x2xf32>
    %102 = vector.shape_cast %101 : vector<1x2xf32> to vector<1x1x2xf32>
    %c0_72 = arith.constant 0 : index
    %c0_73 = arith.constant 0 : index
    %c0_74 = arith.constant 0 : index
    %103 = vector.load %arg12[%c0_72, %c0_73, %c0_74] : memref<1x1x2xf32, #tpu.memory_space<vmem>>, vector<1x1x2xf32>
    tpu.vector_store %arg12[%c0_72, %c0_73, %c0_74], %102 {strides = array<i32>} : memref<1x1x2xf32, #tpu.memory_space<vmem>>, vector<1x1x2xf32>,
    return
  }
  func.func @transform_0(%arg0: i32) -> (i32, i32, i32) {
    %c0_i32 = arith.constant 0 : i32
    %c0_i32_0 = arith.constant 0 : i32
    %c0_i32_1 = arith.constant 0 : i32
    return %arg0, %c0_i32, %c0_i32_0 : i32, i32, i32
  }
  func.func @transform_1(%arg0: i32) -> (i32, i32) {
    %c0_i32 = arith.constant 0 : i32
    %c0_i32_0 = arith.constant 0 : i32
    %c0_i32_1 = arith.constant 0 : i32
    return %c0_i32, %c0_i32_0 : i32, i32
  }
  func.func @transform_2(%arg0: i32) -> (i32, i32) {
    %c0_i32 = arith.constant 0 : i32
    %c0_i32_0 = arith.constant 0 : i32
    %c0_i32_1 = arith.constant 0 : i32
    return %c0_i32, %c0_i32_0 : i32, i32
  }
  func.func @transform_3(%arg0: i32) -> (i32, i32, i32) {
    %c0_i32 = arith.constant 0 : i32
    %c0_i32_0 = arith.constant 0 : i32
    %c0_i32_1 = arith.constant 0 : i32
    %c0_i32_2 = arith.constant 0 : i32
    return %c0_i32, %c0_i32_0, %c0_i32_1 : i32, i32, i32
  }
  func.func @transform_4(%arg0: i32) -> (i32, i32) {
    %c0_i32 = arith.constant 0 : i32
    %c0_i32_0 = arith.constant 0 : i32
    %c0_i32_1 = arith.constant 0 : i32
    return %c0_i32, %c0_i32_0 : i32, i32
  }
  func.func @transform_5(%arg0: i32) -> (i32, i32, i32) {
    %c0_i32 = arith.constant 0 : i32
    %c0_i32_0 = arith.constant 0 : i32
    %c0_i32_1 = arith.constant 0 : i32
    %c0_i32_2 = arith.constant 0 : i32
    return %c0_i32, %c0_i32_0, %c0_i32_1 : i32, i32, i32
  }
  func.func @transform_6(%arg0: i32) -> (i32, i32) {
    %c0_i32 = arith.constant 0 : i32
    %c0_i32_0 = arith.constant 0 : i32
    %c0_i32_1 = arith.constant 0 : i32
    return %c0_i32, %c0_i32_0 : i32, i32
  }
  func.func @transform_7(%arg0: i32) -> (i32, i32, i32) {
    %c0_i32 = arith.constant 0 : i32
    %c0_i32_0 = arith.constant 0 : i32
    %c0_i32_1 = arith.constant 0 : i32
    %c0_i32_2 = arith.constant 0 : i32
    return %c0_i32, %c0_i32_0, %c0_i32_1 : i32, i32, i32
  }
  func.func @transform_8(%arg0: i32) -> (i32, i32) {
    %c0_i32 = arith.constant 0 : i32
    %c0_i32_0 = arith.constant 0 : i32
    %c0_i32_1 = arith.constant 0 : i32
    return %c0_i32, %c0_i32_0 : i32, i32
  }
  func.func @transform_9(%arg0: i32) -> (i32, i32) {
    %c0_i32 = arith.constant 0 : i32
    %c0_i32_0 = arith.constant 0 : i32
    %c0_i32_1 = arith.constant 0 : i32
    return %c0_i32, %c0_i32_0 : i32, i32
  }
  func.func @transform_10(%arg0: i32) -> (i32, i32) {
    %c0_i32 = arith.constant 0 : i32
    %c0_i32_0 = arith.constant 0 : i32
    %c0_i32_1 = arith.constant 0 : i32
    return %c0_i32, %c0_i32_0 : i32, i32
  }
  func.func @transform_11(%arg0: i32) -> (i32, i32, i32) {
    %c0_i32 = arith.constant 0 : i32
    %c0_i32_0 = arith.constant 0 : i32
    %c0_i32_1 = arith.constant 0 : i32
    return %arg0, %c0_i32, %c0_i32_0 : i32, i32, i32
  }
}

</mosaic_0001>

<bundles_post_ra>
// kernel: tpu_custom_call.1
= control target key start
LH: loop header
LB: loop body
LE: loop exit
PB: predicated region body
PF: predicated region fallthrough
CT: control target
= control target key end

     0   :  { %16 = vsyncpa [#allocation3], 0  ;;  %s1699_s0 = inlined_call_operand.hbm [shape: f32[4,8,50], index: 0, kind: input, shape index: {}]   ;;  %s1700_s1 = inlined_call_operand.vmem [shape: f32[50,32], index: 1, kind: input, shape index: {}]   ;;  %s1701_s2 = inlined_call_operand.vmem [shape: f32[1,32], index: 2, kind: input, shape index: {}]   ;;  %s1702_s3 = inlined_call_operand.vmem [shape: f32[3,32,100], index: 3, kind: input, shape index: {}]   ;;  %s1703_s4 = inlined_call_operand.vmem [shape: f32[1,100], index: 4, kind: input, shape index: {}]   ;;  %s1704_s5 = inlined_call_operand.vmem [shape: f32[4,32,100], index: 5, kind: input, shape index: {}]   ;;  %s1705_s6 = inlined_call_operand.vmem [shape: f32[1,100], index: 6, kind: input, shape index: {}]   ;;  %s1706_s7 = inlined_call_operand.vmem [shape: f32[5,32,100], index: 7, kind: input, shape index: {}]   ;;  %s1707_s8 = inlined_call_operand.vmem [shape: f32[1,100], index: 8, kind: input, shape index: {}]   ;;  %s1708_s9 = inlined_call_operand.vmem [shape: f32[300,2], index: 9, kind: input, shape index: {}]   ;;  %s1709_s10 = inlined_call_operand.vmem [shape: f32[1,2], index: 10, kind: input, shape index: {}]   ;;  %s1710_s11 = inlined_call_operand.vmem [shape: f32[4,1,2], index: 11, kind: output, shape index: {}]  }
   0x1   :  { %18 = vsyncpa [#allocation3 + $0x1], 0  ;;  %s1268_s17 = smov 0   ;;  %s1270_s18 = smov 0  }
   0x2   :  { %s1272_s19 = smov 0   ;;  %s1274_s20 = smov 0  }
   0x3 LB: > { %1712 = sst [smem:[#allocation5_spill]] %s1202_s19  ;;  %s1287_s21 = sadd.s32 4294967295, %s1206_s20   ;;  %s1206_s20 = sphi %s1274_s20, %s1721_s20   ;;  %s1202_s19 = sphi %s1272_s19, %s1718_s19   ;;  %s1198_s18 = sphi %s1270_s18, %s1720_s18   ;;  %s1194_s17 = sphi %s1268_s17, %s1719_s17  }
   0x4   : > { %s1290_s22 = sadd.s32 1, %s1206_s20   ;;  %s31_s24 = sadd.s32 1, %s1202_s19 }
   0x5   : > { %s28_s23 = ssub.s32 %s1206_s20, %s1290_s22  ;;  %p38_p1 = scmp.ne.s32.totalorder %s1202_s19, %s1198_s18 }
   0x6   : > { %p29_p0 = scmp.eq.s32.totalorder %s28_s23, 0  ;;  %p39_p2 = scmp.eq.s32.totalorder %s1206_s20, 0 }
   0x7   : > { %p44_p3 = scmp.ne.s32.totalorder %s1198_s18, %s1194_s17  ;;  %p45_p5 = scmp.eq.s32.totalorder %s1287_s21, 0 }
   0x8   : > { %s1300_s25 = scalar_select %p29_p0, %s1202_s19, %s31_s24  }
   0x9   : > { %p1302_p4 = por %p39_p2, %p38_p1  ;;  %p1105_p6 = scmp.lt.s32.totalorder %s1206_s20, 4 }
   0xa   : > { %1713 = sst [smem:[#allocation6_spill]] %s1300_s25  ;;  %p1308_p7 = por %p45_p5, %p44_p3 }
   0xb   : > { %s334_s28 = sand.u32 1, %s1202_s19   ;;  %s1038_s30 = sshll.u32 %s1206_s20, 3 }
   0xc   : > { %s1037_s29 = sshll.u32 %s334_s28, 3  ;;  %s342_s14 = scalar_lea.hbm %s1699_s0, %s1038_s30 }
   0xd   : > { %s338_s15 = scalar_lea.vmem [#allocation2], %s1037_s29  ;;  %s344_s17 = sshll.u32 %s342_s14, 4  ;;  %s345_s17 = int_to_ptr.hbm [resolvable:$true] %s344_s17 }
   0xe   : > { %s346_s16 = sshll.u32 %s338_s15, 4  ;;  %p1319_p8 = pnand %p1105_p6, %p1302_p4  ;;  %s347_s16 = int_to_ptr.vmem [resolvable:$true] %s346_s16 }
   0xf   : > { %p1039_p9 = scmp.ge.s32.totalorder %s1206_s20, 1  ;;  %p351_p10 = scmp.lt.s32.totalorder %s1206_s20, 5 }
  0x10   : > { %s335_s24 = scalar_lea.sflag [#allocation3], %s334_s28  ;;  %s1142_s25 = sshra.s32 %s345_s17, 4  ;;  %s1143_s25 = int_to_ptr.hbm [resolvable:$true] %s1142_s25 }
  0x11   : > { %s1144_s19 = scalar_lea.hbm %s1143_s25, 8  ;;  %p1146_p12 = pneg %p1319_p8 }
  0x12   : > { %p1145_p11 = scmp.ne.s32.totalorder %s1143_s25, %s1144_s19  ;;  %s1149_s26 = scalar_lea.hbm %s1699_s0, 32 }
  0x13   : > { %p1150_p1 = scmp.lt.s32.totalorder %s1143_s25, %s1699_s0  ;;  %p1151_p2 = scmp.lt.s32.totalorder %s1149_s26, %s1144_s19 }
  0x14   : > { %p1147_p13 = pnand %p1146_p12, %p1145_p11 }
  0x15   : > { %p1152_p3 = por %p1151_p2, %p1150_p1 }
  0x16   : > { %p1148_p0 = pneg %p1147_p13 }
  0x18   : > { %p1153_p4 = pnand %p1152_p3, %p1148_p0 }
  0x1a   : > { %1156 = shalt.err (!%p1153_p4)
}
  0x1b   : > { %1104 = dma.hbm_to_vmem [thread:$0]  (!%p1319_p8), %s345_s17, 128, %s347_s16, %s335_s24  }
  0x1c   : > { %p352_p5 = pnand %p1039_p9, %p351_p10 }
  0x1d   : > { %s357_s28 = sand.u32 (!%p352_p5), 1, %s1198_s18  }
  0x1e   : > { %355 = sbr.rel (%p352_p5) target bundleno = 623 (0x26f), region = 64  ;;  %s1040_s14 = sshll.u32 (!%p352_p5), %s357_s28, 3 }
  0x1f   : > { %s358_s15 = scalar_lea.sflag (!%p352_p5), [#allocation3], %s357_s28  ;;  %s361_s29 = scalar_lea.vmem (!%p352_p5), [#allocation2], %s1040_s14 }
  0x23   : > { %1189 = dma.done.wait (%p1308_p7), %s358_s15, 128  }
  0x24   : > { %1191 = vsyncadd (%p1308_p7), %s358_s15, 4294967168  ;;  %vm418_vm0 = vcmask 1041408   ;;  %v409_v0 = vld [vmem:[%s1700_s1 + $0x30] sm:$0x3]  ;;  %v408_v1 = vld [vmem:[%s1700_s1 + $0x28] sm:$0xff]  ;;  %vm414_vm1 = vcmask 408576  }
  0x25   : > { %1041 = vmatpush.msk.msra.mxu2 %vm418_vm0, %v409_v0  ;;  %v407_v2 = vld [vmem:[%s1700_s1 + $0x20] sm:$0xff]  ;;  %v1046_v3 = vld [vmem:[%s1702_s3 + $0x38] sm:$0xff]  ;;  %v405_v7 = vld [vmem:[%s1700_s1 + $0x10] sm:$0xff]  ;;  %vm492_vm2 = vcmask 261120   ;;  %vm584_vm3 = vcmask 1043456   ;;  %vm572_vm4 = vcmask 816128  }
  0x26   : > { %507 = vmatpush.msra.mxu1 %v1046_v3  ;;  %v1052_v4 = vld [vmem:[%s1702_s3 + $0x58] sm:$0xff]  ;;  %v404_v8 = vld [vmem:[%s1700_s1 + $0x8] sm:$0xff]  ;;  %v403_v9 = vld [vmem:[%s1700_s1] sm:$0xff]  ;;  %vm719_vm5 = vcmask 815104   ;;  %vm580_vm6 = vcmask 818176   ;;  %vm938_vm7 = vcmask 814080  }
  0x27   : > { %432 = vmatpush.msra.mxu2 %v408_v1  ;;  %v1065_v5 = vld [vmem:[%s1704_s5 + $0x58] sm:$0xff]  ;;  %557 = vmatpush.msra.mxu3 %v1052_v4  ;;  %v402_v10 = vld [vmem:[%s361_s29] sm:$0xff]  ;;  %v1045_v12 = vld [vmem:[%s1702_s3 + $0x30] sm:$0xff]  ;;  %p399_p6 = scmp.lt.s32.totalorder %s1287_s21, 3  ;;  %vm973_vm8 = vcmask 8192  }
  0x28   : > { %v406_v6 = vld [vmem:[%s1700_s1 + $0x18] sm:$0xff]  ;;  %675 = vmatpush.msra.mxu0 %v1065_v5  ;;  %v1051_v13 = vld [vmem:[%s1702_s3 + $0x50] sm:$0xff]  ;;  %508 = vmatpush.msra.mxu1 %v1045_v12  ;;  %v1044_v16 = vld [vmem:[%s1702_s3 + $0x28] sm:$0xff] }
  0x29   : > { %433 = vmatpush.msra.mxu2 %v407_v2  ;;  %v1059_v11 = vld [vmem:[%s1704_s5 + $0x38] sm:$0xff]  ;;  %v1058_v14 = vld [vmem:[%s1704_s5 + $0x30] sm:$0xff]  ;;  %558 = vmatpush.msra.mxu3 %v1051_v13  ;;  %v1050_v17 = vld [vmem:[%s1702_s3 + $0x48] sm:$0xff]  ;;  %s1723_s21 = smov (!%p399_p6, %s1287_s21), 3 }
  0x2a   : > { %v1064_v15 = vld [vmem:[%s1704_s5 + $0x50] sm:$0xff]  ;;  %v1057_v18 = vld [vmem:[%s1704_s5 + $0x28] sm:$0xff]  ;;  %509 = vmatpush.msra.mxu1 %v1044_v16  ;;  %v1043_v20 = vld [vmem:[%s1702_s3 + $0x20] sm:$0xff]  ;;  %s401_s30 = scalar_lea.vmem %s1710_s11, %s1723_s21 }
  0x2b   : > { %434 = vmatpush.msra.mxu2 %v406_v6  ;;  %676 = vmatpush.msra.mxu0 %v1064_v15  ;;  %v1063_v19 = vld [vmem:[%s1704_s5 + $0x48] sm:$0xff]  ;;  %v1049_v21 = vld [vmem:[%s1702_s3 + $0x40] sm:$0xff]  ;;  %v484_v24 = vld [vmem:[%s1702_s3 + $0x18] sm:$0xff] }
  0x2c   : > { %559 = vmatpush.msra.mxu3 %v1050_v17  ;;  %v1056_v22 = vld [vmem:[%s1704_s5 + $0x20] sm:$0xff]  ;;  %510 = vmatpush.msra.mxu1 %v1043_v20  ;;  %v612_v25 = vld [vmem:[%s1704_s5 + $0x18] sm:$0xff]  ;;  %v483_v28 = vld [vmem:[%s1702_s3 + $0x10] sm:$0xff] }
  0x2d   : > { %435 = vmatpush.msra.mxu2 %v405_v7  ;;  %677 = vmatpush.msra.mxu0 %v1063_v19  ;;  %v1062_v23 = vld [vmem:[%s1704_s5 + $0x40] sm:$0xff]  ;;  %v1070_v26 = vld [vmem:[%s1704_s5 + $0x78] sm:$0xff]  ;;  %v611_v29 = vld [vmem:[%s1704_s5 + $0x10] sm:$0xff] }
  0x2e   : > { %560 = vmatpush.msra.mxu3 %v1049_v21  ;;  %529 = vmatpush.msrb.mxu1 %v484_v24  ;;  %v1077_v27 = vld [vmem:[%s1706_s7 + $0x38] sm:$0xff]  ;;  %v1069_v30 = vld [vmem:[%s1704_s5 + $0x70] sm:$0xff]  ;;  %v482_v32 = vld [vmem:[%s1702_s3 + $0x8] sm:$0xff] }
  0x2f   : > { %436 = vmatpush.msra.mxu2 %v404_v8  ;;  %678 = vmatpush.msra.mxu0 %v1062_v23  ;;  %v1076_v31 = vld [vmem:[%s1706_s7 + $0x30] sm:$0xff]  ;;  %v610_v33 = vld [vmem:[%s1704_s5 + $0x8] sm:$0xff]  ;;  %v481_v36 = vld [vmem:[%s1702_s3] sm:$0xff] }
  0x30   : > { %650 = vmatpush.msrb.mxu3 %v612_v25  ;;  %530 = vmatpush.msrb.mxu1 %v483_v28  ;;  %v1068_v34 = vld [vmem:[%s1704_s5 + $0x68] sm:$0xff]  ;;  %v609_v37 = vld [vmem:[%s1704_s5] sm:$0xff]  ;;  %v805_v45 = vld [vmem:[%s1706_s7 + $0x18] sm:$0xff] }
  0x31   : > { %437 = vmatpush.msra.mxu2 %v403_v9  ;;  %823 = vmatpush.msrb.mxu0 %v1077_v27  ;;  %v1075_v35 = vld [vmem:[%s1706_s7 + $0x28] sm:$0xff]  ;;  %v1067_v38 = vld [vmem:[%s1704_s5 + $0x60] sm:$0xff]  ;;  %v1083_v46 = vld [vmem:[%s1706_s7 + $0x58] sm:$0xff] }
  0x32   : > { %1042 = vmatmul.msk.f32.vlgmr.msra.gmra.mxu2 %vm414_vm1, %v402_v10  ;;  %651 = vmatpush.msrb.mxu3 %v611_v29  ;;  %v1074_v39 = vld [vmem:[%s1706_s7 + $0x20] sm:$0xff]  ;;  %v804_v47 = vld [vmem:[%s1706_s7 + $0x10] sm:$0xff]  ;;  %v803_v49 = vld [vmem:[%s1706_s7 + $0x8] sm:$0xff] }
  0x33   : > { %630 = vmatpush.msrb.mxu2 %v1059_v11  ;;  %824 = vmatpush.msrb.mxu0 %v1076_v31  ;;  %v1138_v40 = vld [vmem:[%s1701_s2] ss:$0 sm:$0xff]  ;;  %v1082_v48 = vld [vmem:[%s1706_s7 + $0x50] sm:$0xff]  ;;  %v1081_v50 = vld [vmem:[%s1706_s7 + $0x48] sm:$0xff] }
  0x34   : > { %531 = vmatpush.msrb.mxu1 %v482_v32  ;;  %652 = vmatpush.msrb.mxu3 %v610_v33  ;;  %v802_v52 = vld [vmem:[%s1706_s7] sm:$0xff]  ;;  %v1088_v54 = vld [vmem:[%s1706_s7 + $0x78] sm:$0xff]  ;;  %v1087_v55 = vld [vmem:[%s1706_s7 + $0x70] sm:$0xff] }
  0x35   : > { %631 = vmatpush.msrb.mxu2 %v1058_v14  ;;  %825 = vmatpush.msrb.mxu0 %v1075_v35  ;;  %v1080_v53 = vld [vmem:[%s1706_s7 + $0x40] sm:$0xff]  ;;  %v1086_v56 = vld [vmem:[%s1706_s7 + $0x68] sm:$0xff]  ;;  %v453_v59 = vld [vmem:[%s1708_s9 + $0x58] sm:$0xff] }
  0x36   : > { %532 = vmatpush.msrb.mxu1 %v481_v36  ;;  %653 = vmatpush.msrb.mxu3 %v609_v37  ;;  %v1085_v57 = vld [vmem:[%s1706_s7 + $0x60] sm:$0xff]  ;;  %v452_v60 = vld [vmem:[%s1708_s9 + $0x50] sm:$0xff]  ;;  %v451_v61 = vld [vmem:[%s1708_s9 + $0x48] sm:$0xff] }
  0x37   : > { %632 = vmatpush.msrb.mxu2 %v1057_v18  ;;  %826 = vmatpush.msrb.mxu0 %v1074_v39  ;;  %v1522_v58 = vld [vmem:[%s1708_s9 + $0x60] sm:$0xff]  ;;  %v465_v0 = vld [vmem:[%s1708_s9 + $0xb8] sm:$0xff]  ;;  %v464_v3 = vld [vmem:[%s1708_s9 + $0xb0] sm:$0xff] }
  0x38   : > { %v466_v62 = vld [vmem:[%s1708_s9 + $0xc0] sm:$0xff]  ;;  %v760_v2 = vrot.slane %v465_v0, 4  ;;  %v449_v4 = vld [vmem:[%s1708_s9 + $0x38] sm:$0xff]  ;;  %v758_v6 = vrot.slane %v464_v3, 4  ;;  %v463_v7 = vld [vmem:[%s1708_s9 + $0xa8] sm:$0xff] }
  0x39   : > { %633 = vmatpush.msrb.mxu2 %v1056_v22  ;;  %v762_v63 = vrot.slane %v466_v62, 4  ;;  %v450_v1 = vld [vmem:[%s1708_s9 + $0x40] sm:$0xff]  ;;  %v448_v8 = vld [vmem:[%s1708_s9 + $0x30] sm:$0xff]  ;;  %v756_v10 = vrot.slane %v463_v7, 4  ;;  %v447_v12 = vld [vmem:[%s1708_s9 + $0x28] sm:$0xff] }
  0x3a   : > { %v761_v9 = vsel %vm584_vm3, %v758_v6, %v760_v2  ;;  %v462_v11 = vld [vmem:[%s1708_s9 + $0xa0] sm:$0xff]  ;;  %v461_v15 = vld [vmem:[%s1708_s9 + $0x98] sm:$0xff]  ;;  %v460_v19 = vld [vmem:[%s1708_s9 + $0x90] sm:$0xff] }
  0x3b   : > { %704 = vmatpush.msra.mxu2 %v1070_v26  ;;  %v763_v5 = vsel %vm584_vm3, %v760_v2, %v762_v63  ;;  %v759_v13 = vsel %vm584_vm3, %v756_v10, %v758_v6  ;;  %v754_v14 = vrot.slane %v462_v11, 4  ;;  %v446_v16 = vld [vmem:[%s1708_s9 + $0x20] sm:$0xff]  ;;  %v752_v18 = vrot.slane %v461_v15, 4  ;;  %v445_v20 = vld [vmem:[%s1708_s9 + $0x18] sm:$0xff]  ;;  %v459_v23 = vld [vmem:[%s1708_s9 + $0x88] sm:$0xff] }
  0x3c   : > { %v750_v22 = vrot.slane %v460_v19, 4  ;;  %v444_v24 = vld [vmem:[%s1708_s9 + $0x10] sm:$0xff]  ;;  %v748_v26 = vrot.slane %v459_v23, 4  ;;  %v458_v27 = vld [vmem:[%s1708_s9 + $0x80] sm:$0xff]  ;;  %v443_v28 = vld [vmem:[%s1708_s9 + $0x8] sm:$0xff] }
  0x3d   : > { %705 = vmatpush.msra.mxu2 %v1069_v30  ;;  %v757_v17 = vsel %vm584_vm3, %v754_v14, %v756_v10  ;;  %v755_v21 = vsel %vm584_vm3, %v752_v18, %v754_v14  ;;  %v746_v30 = vrot.slane %v458_v27, 4  ;;  %v457_v31 = vld [vmem:[%s1708_s9 + $0x78] sm:$0xff]  ;;  %v442_v32 = vld [vmem:[%s1708_s9] sm:$0xff]  ;;  %v456_v35 = vld [vmem:[%s1708_s9 + $0x70] sm:$0xff] }
  0x3e   : > { %v753_v25 = vsel %vm584_vm3, %v750_v22, %v752_v18  ;;  %v751_v29 = vsel %vm584_vm3, %v748_v26, %v750_v22  ;;  %v1093_v36 = vld [vmem:[%s1706_s7 + $0x98] sm:$0xff]  ;;  %v479_v18 = vld [vmem:[%s1708_s9 + $0x128] sm:$0xf]  ;;  %v478_v19 = vld [vmem:[%s1708_s9 + $0x120] sm:$0xff] }
  0x3f   : > { %706 = vmatpush.msra.mxu2 %v1068_v34  ;;  %v749_v33 = vsel %vm584_vm3, %v746_v30, %v748_v26  ;;  %v744_v34 = vrot.slane %v457_v31, 4  ;;  %v474_v22 = vld [vmem:[%s1708_s9 + $0x100] sm:$0xff]  ;;  %v473_v23 = vld [vmem:[%s1708_s9 + $0xf8] sm:$0xff]  ;;  %v467_v31 = vld [vmem:[%s1708_s9 + $0xc8] sm:$0xff] }
  0x40   : > { %v470_v26 = vld [vmem:[%s1708_s9 + $0xe0] sm:$0xff]  ;;  %v469_v27 = vld [vmem:[%s1708_s9 + $0xd8] sm:$0xff] }
  0x41   : > { %707 = vmatpush.msra.mxu2 %v1067_v38  ;;  %v747_v37 = vsel %vm584_vm3, %v744_v34, %v746_v30  ;;  %v742_v38 = vrot.slane %v456_v35, 4 }
  0xb5   : > { %v439_v41 = vpop.f32.mrf.mxu2 }
  0xb6   : > { %v1464_v42 = vadd.f32 %v1138_v40, %v439_v41  ;;  %v455_v40 = vld [vmem:[%s1708_s9 + $0x68] sm:$0xff]  ;;  %v1092_v41 = vld [vmem:[%s1706_s7 + $0x90] sm:$0xff] }
  0xb8   : > { %v491_v43 = vrot.slane %v1464_v42, 1  ;;  %v542_v44 = vrot.slane %v1464_v42, 2  ;;  %v689_v51 = vrot.slane %v1464_v42, 3 }
  0xba   : > { %1047 = vmatmul.msk.f32.vlgmr.msra.gmra.mxu1 %vm492_vm2, %v491_v43  ;;  %1053 = vmatmul.msk.f32.vlgmr.msra.gmra.mxu3 %vm492_vm2, %v542_v44 }
  0xbb   : > { %1060 = vmatmul.msk.f32.vlgmr.msrb.gmra.mxu2 %vm492_vm2, %v491_v43  ;;  %1066 = vmatmul.msk.f32.vlgmr.msra.gmra.mxu0 %vm492_vm2, %v542_v44 }
  0xbc   : > { %843 = vmatpush.msrb.mxu2 %v805_v45  ;;  %868 = vmatpush.msra.mxu0 %v1083_v46  ;;  %v1091_v45 = vld [vmem:[%s1706_s7 + $0x88] sm:$0xff] }
  0xbd   : > { %1054 = vmatpush.msk.msra.mxu1 %vm584_vm3, %v1522_v58  ;;  %1072 = vmatpush.msk.msra.mxu3 %vm584_vm3, %v762_v63  ;;  %v1140_v63 = vld [vmem:[%s1705_s6] ss:$0 sm:$0xff] }
  0xbe   : > { %844 = vmatpush.msrb.mxu2 %v804_v47  ;;  %869 = vmatpush.msra.mxu0 %v1082_v48  ;;  %v739_v47 = vrot.slane %v1522_v58, 4  ;;  %v1090_v48 = vld [vmem:[%s1706_s7 + $0x80] sm:$0xff] }
  0xbf   : > { %592 = vmatpush.msra.mxu1 %v453_v59  ;;  %785 = vmatpush.msra.mxu3 %v763_v5 }
  0xc0   : > { %845 = vmatpush.msrb.mxu2 %v803_v49  ;;  %870 = vmatpush.msra.mxu0 %v1081_v50 }
  0xc1   : > { %593 = vmatpush.msra.mxu1 %v452_v60  ;;  %786 = vmatpush.msra.mxu3 %v761_v9 }
  0xc2   : > { %1048 = vmatmul.msk.f32.vlgmr.msrb.gmra.mxu1 %vm492_vm2, %v1464_v42  ;;  %1061 = vmatmul.msk.f32.vlgmr.msrb.gmra.mxu3 %vm492_vm2, %v1464_v42 }
  0xc3   : > { %1071 = vmatmul.msk.f32.vlgmr.msra.gmra.mxu2 %vm492_vm2, %v689_v51  ;;  %1078 = vmatmul.msk.f32.vlgmr.msrb.gmra.mxu0 %vm492_vm2, %v491_v43  ;;  %v745_v43 = vsel %vm584_vm3, %v742_v38, %v744_v34 }
  0xc4   : > { %846 = vmatpush.msrb.mxu2 %v802_v52  ;;  %871 = vmatpush.msra.mxu0 %v1080_v53 }
  0xc5   : > { %594 = vmatpush.msra.mxu1 %v451_v61  ;;  %787 = vmatpush.msra.mxu3 %v759_v13 }
  0xc6   : > { %894 = vmatpush.msra.mxu2 %v1088_v54  ;;  %v1139_v54 = vld [vmem:[%s1703_s4] ss:$0 sm:$0xff]  ;;  %1095 = vmatpush.msk.msrb.mxu0 %vm584_vm3, %v479_v18 }
  0xc7   : > { %595 = vmatpush.msra.mxu1 %v450_v1  ;;  %788 = vmatpush.msra.mxu3 %v757_v17  ;;  %v908_v17 = vrot.slane %v1464_v42, 4 }
  0xc8   : > { %895 = vmatpush.msra.mxu2 %v1087_v55  ;;  %956 = vmatpush.msrb.mxu0 %v478_v19 }
  0xc9   : > { %596 = vmatpush.msra.mxu1 %v449_v4  ;;  %789 = vmatpush.msra.mxu3 %v755_v21  ;;  %v475_v21 = vld [vmem:[%s1708_s9 + $0x108] sm:$0xff] }
  0xca   : > { %896 = vmatpush.msra.mxu2 %v1086_v56 }
  0xcb   : > { %1079 = vmatmul.msk.f32.vlgmr.msrb.gmra.mxu2 %vm492_vm2, %v1464_v42  ;;  %1084 = vmatmul.msk.f32.vlgmr.msra.gmra.mxu0 %vm492_vm2, %v542_v44  ;;  %v740_v44 = vrot.slane %v455_v40, 4  ;;  %v476_v42 = vld [vmem:[%s1708_s9 + $0x110] sm:$0xff] }
  0xcc   : > { %897 = vmatpush.msra.mxu2 %v1085_v57  ;;  %597 = vmatpush.msra.mxu1 %v448_v8 }
  0xcd   : > { %790 = vmatpush.msra.mxu3 %v753_v25  ;;  %v743_v46 = vsel %vm584_vm3, %v740_v44, %v742_v38  ;;  %v741_v49 = vsel %vm584_vm3, %v739_v47, %v740_v44  ;;  %v471_v25 = vld [vmem:[%s1708_s9 + $0xe8] sm:$0xff]  ;;  %v1141_v38 = vld [vmem:[%s1707_s8] ss:$0 sm:$0xff] }
  0xce   : > { %598 = vmatpush.msra.mxu1 %v447_v12 }
  0xcf   : > { %791 = vmatpush.msra.mxu3 %v751_v29 }
  0xd0   : > { %599 = vmatpush.msra.mxu1 %v446_v16 }
  0xd1   : > { %792 = vmatpush.msra.mxu3 %v749_v33 }
  0xd2   : > { %600 = vmatpush.msra.mxu1 %v445_v20  ;;  %v477_v20 = vld [vmem:[%s1708_s9 + $0x118] sm:$0xff] }
  0xd3   : > { %1089 = vmatmul.msk.f32.vlgmr.msra.gmra.mxu2 %vm492_vm2, %v689_v51  ;;  %793 = vmatpush.msra.mxu3 %v747_v37 }
  0xd4   : > { %601 = vmatpush.msra.mxu1 %v444_v24  ;;  %957 = vmatpush.msrb.mxu0 %v477_v20  ;;  %v472_v24 = vld [vmem:[%s1708_s9 + $0xf0] sm:$0xff] }
  0xd5   : > { %794 = vmatpush.msra.mxu3 %v745_v43 }
  0xd6   : > { %602 = vmatpush.msra.mxu1 %v443_v28  ;;  %958 = vmatpush.msrb.mxu0 %v476_v42  ;;  %v468_v28 = vld [vmem:[%s1708_s9 + $0xd0] sm:$0xff] }
  0xd7   : > { %795 = vmatpush.msra.mxu3 %v743_v46 }
  0xd8   : > { %603 = vmatpush.msra.mxu1 %v442_v32  ;;  %959 = vmatpush.msrb.mxu0 %v475_v21 }
  0xd9   : > { %796 = vmatpush.msra.mxu3 %v741_v49 }
  0xda   : > { %923 = vmatpush.msrb.mxu1 %v1093_v36  ;;  %960 = vmatpush.msrb.mxu0 %v474_v22 }
  0xdc   : > { %924 = vmatpush.msrb.mxu1 %v1092_v41  ;;  %961 = vmatpush.msrb.mxu0 %v473_v23 }
  0xde   : > { %925 = vmatpush.msrb.mxu1 %v1091_v45  ;;  %962 = vmatpush.msrb.mxu0 %v472_v24 }
  0xe0   : > { %926 = vmatpush.msrb.mxu1 %v1090_v48  ;;  %963 = vmatpush.msrb.mxu0 %v471_v25 }
  0xe2   : > { %964 = vmatpush.msrb.mxu0 %v470_v26 }
  0xe4   : > { %965 = vmatpush.msrb.mxu0 %v469_v27 }
  0xe6   : > { %966 = vmatpush.msrb.mxu0 %v468_v28 }
  0xe8   : > { %967 = vmatpush.msrb.mxu0 %v467_v31 }
 0x137   : > { %v512_v39 = vpop.f32.mrf.mxu1 }
 0x138   : > { %v680_v60 = vpop.f32.mrf.mxu0 }
 0x13d   : > { %v562_v50 = vpop.f32.mrf.mxu3 }
 0x13e   : > { %v635_v51 = vpop.f32.mrf.mxu2 }
 0x13f   : > { %v534_v52 = vpop.f32.mrf.mxu1 }
 0x140   : > { %v535_v53 = vadd.f32 %v534_v52, %v512_v39  ;;  %v828_v29 = vpop.f32.mrf.mxu0 }
 0x142   : > { %v565_v55 = vadd.f32 %v562_v50, %v535_v53 }
 0x144   : > { %v570_v56 = vadd.f32 %v1139_v54, %v565_v55 }
 0x145   : > { %v655_v57 = vpop.f32.mrf.mxu3 }
 0x146   : > { %v571_v58 = vmax.f32 %v570_v56, 0.0  ;;  %v656_v59 = vadd.f32 %v655_v57, %v635_v51  ;;  %v709_v1 = vpop.f32.mrf.mxu2  ;;  %v480_v51 = vld [vmem:[%s1709_s10] sm:$0x1] }
 0x148   : > { %v573_v61 = vsel %vm572_vm4, %v571_v58, -inf  ;;  %v683_v62 = vadd.f32 %v680_v60, %v656_v59  ;;  %v873_v34 = vpop.f32.mrf.mxu0 }
 0x149   : > { %v574_v0 = vrot.slane %v573_v61, 4 }
 0x14a   : > { %v712_v2 = vadd.f32 %v709_v1, %v683_v62 }
 0x14b   : > { %v575_v3 = vmax.f32 %v573_v61, %v574_v0 }
 0x14c   : > { %v717_v4 = vadd.f32 %v1140_v63, %v712_v2 }
 0x14d   : > { %v576_v5 = vrot.slane %v575_v3, 2 }
 0x14e   : > { %v718_v6 = vmax.f32 %v717_v4, 0.0  ;;  %v848_v30 = vpop.f32.mrf.mxu2 }
 0x14f   : > { %v577_v7 = vmax.f32 %v575_v3, %v576_v5  ;;  %v849_v33 = vadd.f32 %v848_v30, %v828_v29 }
 0x150   : > { %v720_v8 = vsel %vm719_vm5, %v718_v6, -inf }
 0x151   : > { %v578_v9 = vrot.slane %v577_v7, 1  ;;  %v721_v10 = vrot.slane %v720_v8, 4  ;;  %v876_v36 = vadd.f32 %v873_v34, %v849_v33 }
 0x153   : > { %v722_v11 = vmax.f32 %v720_v8, %v721_v10  ;;  %v579_v12 = vmax.f32 %v577_v7, %v578_v9 }
 0x155   : > { %v723_v13 = vrot.slane %v722_v11, 2  ;;  %1055 = vmatmul.msk.f32.vlgmr.msra.gmra.mxu1 %vm580_vm6, %v579_v12 }
 0x156   : > { %v899_v35 = vpop.f32.mrf.mxu2 }
 0x157   : > { %v724_v14 = vmax.f32 %v722_v11, %v723_v13  ;;  %v902_v37 = vadd.f32 %v899_v35, %v876_v36 }
 0x159   : > { %v725_v15 = vrot.slane %v724_v14, 1 }
 0x15b   : > { %v726_v16 = vmax.f32 %v724_v14, %v725_v15 }
 0x15d   : > { %1073 = vmatmul.msk.f32.vlgmr.msra.gmra.mxu3 %vm580_vm6, %v726_v16  ;;  %1094 = vmatmul.msk.f32.vlgmr.msrb.gmra.mxu1 %vm492_vm2, %v908_v17 }
 0x1d2   : > { %v605_v32 = vpop.f32.mrf.mxu1 }
 0x1d3   : > { %v608_v53 = vadd.f32 %v605_v32, %v480_v51 }
 0x1da   : > { %v928_v39 = vpop.f32.mrf.mxu1 }
 0x1db   : > { %v931_v40 = vadd.f32 %v928_v39, %v902_v37 }
 0x1dd   : > { %v936_v41 = vadd.f32 %v1141_v38, %v931_v40 }
 0x1df   : > { %v937_v43 = vmax.f32 %v936_v41, 0.0 }
 0x1e0   : > { %v798_v52 = vpop.f32.mrf.mxu3 }
 0x1e1   : > { %v939_v44 = vsel %vm938_vm7, %v937_v43, -inf  ;;  %v801_v54 = vadd.f32 %v798_v52, %v608_v53 }
 0x1e2   : > { %v940_v45 = vrot.slane %v939_v44, 4 }
 0x1e4   : > { %v941_v46 = vmax.f32 %v939_v44, %v940_v45 }
 0x1e6   : > { %v942_v47 = vrot.slane %v941_v46, 2 }
 0x1e8   : > { %v943_v48 = vmax.f32 %v941_v46, %v942_v47 }
 0x1ea   : > { %v944_v49 = vrot.slane %v943_v48, 1 }
 0x1ec   : > { %v945_v50 = vmax.f32 %v943_v48, %v944_v49 }
 0x1ee   : > { %1096 = vmatmul.msk.f32.vlgmr.msrb.gmra.mxu0 %vm580_vm6, %v945_v50 }
 0x26b   : > { %v969_v55 = vpop.f32.mrf.mxu0 }
 0x26c   : > { %v972_v56 = vadd.f32 %v969_v55, %v801_v54 }
 0x26e   : > { %974 = vst.msk [vmem:[%s401_s30] sm:$0x1] %vm973_vm8, %v972_v56 }
 0x26f PF: > { %s1717_s27 = sld [smem:[#allocation5_spill]]  ;;  %p21_p7 = scmp.ge.s32.totalorder %s1290_s22, 6  }
 0x270   : > { %s1718_s19 = sld [smem:[#allocation6_spill]]  ;;  %s1719_s17 = smov %s1198_s18 }
 0x271   : > { %s1721_s20 = smov %s1290_s22  ;;  %23 = sbr.rel (!%p21_p7) target bundleno = 3 (0x3), region = 113 }
 0x275   : > { %s1720_s18 = smov %s1717_s27 }
 0x276   :  { %992 = vsyncpa [#allocation3], 1 }
 0x277   :  { %994 = vsyncpa [#allocation3 + $0x1], 1 }

</bundles_post_ra>
